<compile_context>
chip_gen: v7x
topology: tpu7x:2x2x1
jax: 0.10.0
libtpu: 0.0.40
codegen_flags: <defaults>
</compile_context>

<pallas_src>
import jax
import jax.numpy as jnp
from jax.experimental import pallas as pl
from jax.experimental.pallas import tpu as pltpu

LANE = 128  # weight/bias feature dims are lane-padded to 128 (zero padding, numerically exact)


def _round_up(n, m):
    return (n + m - 1) // m * m


def mlp_kernel(x_ref, w1_ref, b1_ref, w2_ref, b2_ref, w3_ref, b3_ref, o_ref):
    # x_ref: [tb, 10] f32, w*: bf16 (lane-padded), b*: f32 [1, 128], o_ref: [out_dim, tb] f32
    # In-kernel bf16 cast of the activation stream (free VPU work; MXU runs bf16 w/ f32 acc).
    x = x_ref[...].astype(jnp.bfloat16)
    # fc1 + relu
    h1 = jnp.dot(x, w1_ref[...], preferred_element_type=jnp.float32)
    h1 = jnp.maximum(h1 + b1_ref[...], 0.0)
    # fc2 + relu
    h2 = jnp.dot(h1.astype(jnp.bfloat16), w2_ref[...], preferred_element_type=jnp.float32)
    h2 = jnp.maximum(h2 + b2_ref[...], 0.0)
    # fc3 (no activation)
    out = jnp.dot(h2.astype(jnp.bfloat16), w3_ref[...], preferred_element_type=jnp.float32)
    out = out + b3_ref[...]                      # [tb, 128] f32, only first out_dim lanes are real
    # Pack before the store: XLU transpose -> [128, tb] (lane-dense rows), keep the real rows.
    out_t = out.T
    o_ref[...] = out_t[: o_ref.shape[0], :]      # [out_dim, tb], unmasked lane-dense store


def _pick_tile(batch, tb_req):
    """Batch tile: multiple of 8 (128 when multi-step), >=2 grid steps when worthwhile."""
    b8 = _round_up(batch, 8)
    if b8 <= 128:
        return b8                                 # one small block; nothing to split
    tb0 = min(tb_req, b8)
    tb0 = max((tb0 // 128) * 128, 128)
    nsteps = max(pl.cdiv(b8, tb0), 2)             # >=2 steps -> both TensorCores on v7x
    return _round_up(pl.cdiv(b8, nsteps), 128)    # rebalanced -> minimal batch padding


def simple_net_forward(x, w1, b1, w2, b2, w3, b3, *, tb=4096):
    """x: [B, 10] f32. Weights stored as [in, out] (transposed vs PyTorch). Returns [B, 2] f32."""
    B, in_dim = x.shape
    out_dim = w3.shape[1]

    # ---- one-time host-side layout prep (lane padding; weights -> bf16, biases stay f32) ----
    def pad_to(a, shape):
        return jnp.zeros(shape, a.dtype).at[: a.shape[0], : a.shape[1]].set(a)

    w1p = pad_to(w1, (in_dim, LANE)).astype(jnp.bfloat16)
    w2p = pad_to(w2, (LANE, LANE)).astype(jnp.bfloat16)
    w3p = pad_to(w3, (LANE, LANE)).astype(jnp.bfloat16)
    b1p = pad_to(b1, (1, LANE))
    b2p = pad_to(b2, (1, LANE))
    b3p = pad_to(b3, (1, LANE))

    tb = _pick_tile(B, tb)
    Bp = _round_up(B, tb)
    xp = x
    if Bp != B:  # only pay a batch zero-pad pass when the tile doesn't divide B
        xp = jnp.zeros((Bp, in_dim), x.dtype).at[:B].set(x)

    grid = (Bp // tb,)

    # Output produced transposed ([out_dim, Bp]) so the in-kernel store is lane-dense.
    out_t = pl.pallas_call(
        mlp_kernel,
        out_shape=jax.ShapeDtypeStruct((out_dim, Bp), jnp.float32),
        grid_spec=pltpu.PrefetchScalarGridSpec(
            num_scalar_prefetch=0,
            grid=grid,
            in_specs=[
                pl.BlockSpec((tb, in_dim), lambda i: (i, 0)),    # x: f32, tiled over batch
                pl.BlockSpec((in_dim, LANE), lambda i: (0, 0)),  # W1: VMEM-resident
                pl.BlockSpec((1, LANE), lambda i: (0, 0)),       # b1
                pl.BlockSpec((LANE, LANE), lambda i: (0, 0)),    # W2
                pl.BlockSpec((1, LANE), lambda i: (0, 0)),       # b2
                pl.BlockSpec((LANE, LANE), lambda i: (0, 0)),    # W3
                pl.BlockSpec((1, LANE), lambda i: (0, 0)),       # b3
            ],
            out_specs=pl.BlockSpec((out_dim, tb), lambda i: (0, i)),
        ),
        compiler_params=pltpu.CompilerParams(
            dimension_semantics=("parallel",),  # batch tiles independent -> megacore on v7x
        ),
    )(xp, w1p, b1p, w2p, b2p, w3p, b3p)

    # Drop batch padding; tiny (2, B) -> (B, 2) transpose back to the PyTorch layout.
    return out_t[:, :B].T


def init_params(key):
    # Deterministic synthetic init (PyTorch Linear shapes, stored transposed as [in, out]).
    k = jax.random.split(key, 6)
    w1 = jax.random.uniform(k[0], (10, 20), jnp.float32, -0.3, 0.3)
    b1 = jax.random.uniform(k[1], (1, 20), jnp.float32, -0.3, 0.3)
    w2 = jax.random.uniform(k[2], (20, 5), jnp.float32, -0.2, 0.2)
    b2 = jax.random.uniform(k[3], (1, 5), jnp.float32, -0.2, 0.2)
    w3 = jax.random.uniform(k[4], (5, 2), jnp.float32, -0.4, 0.4)
    b3 = jax.random.uniform(k[5], (1, 2), jnp.float32, -0.4, 0.4)
    return w1, b1, w2, b2, w3, b3


if __name__ == "__main__":
    key = jax.random.PRNGKey(0)
    key_x, key_p = jax.random.split(key)

    B = 256                     # small demo batch; tile picker -> tb=128, 2 grid steps
    x = jax.random.normal(key_x, (B, 10), jnp.float32)
    w1, b1, w2, b2, w3, b3 = init_params(key_p)

    out = simple_net_forward(x, w1, b1, w2, b2, w3, b3)
    out = jax.block_until_ready(out)

    # Pure-JAX f32 reference (kernel runs the matmuls in bf16 -> loosened tolerance).
    ref = jnp.maximum(x @ w1 + b1, 0.0)
    ref = jnp.maximum(ref @ w2 + b2, 0.0)
    ref = ref @ w3 + b3
    assert out.shape == (B, 2)
    assert jnp.allclose(out, ref, atol=3e-2, rtol=3e-2)

    print("KERNEL_OK")
</pallas_src>

<mosaic_0001>
module attributes {stable_mosaic.version = 11 : i64} {
  func.func @mlp_kernel(%arg0: i32, %arg1: memref<128x10xf32, #tpu.memory_space<vmem>>, %arg2: memref<10x128xbf16, #tpu.memory_space<vmem>>, %arg3: memref<1x128xf32, #tpu.memory_space<vmem>>, %arg4: memref<128x128xbf16, #tpu.memory_space<vmem>>, %arg5: memref<1x128xf32, #tpu.memory_space<vmem>>, %arg6: memref<128x128xbf16, #tpu.memory_space<vmem>>, %arg7: memref<1x128xf32, #tpu.memory_space<vmem>>, %arg8: memref<2x128xf32, #tpu.memory_space<vmem>>) attributes {dimension_semantics = [#tpu.dimension_semantics<parallel>], iteration_bounds = array<i64: 2>, scalar_prefetch = 0 : i64, scratch_operands = 0 : i64, tpu.core_type = #tpu.core_type<tc>, window_params = [{transform_indices = @transform_0, window_bounds = array<i64: 128, 10>}, {pipeline_mode = #tpu.pipeline_mode<synchronous>, transform_indices = @transform_1, window_bounds = array<i64: 10, 128>}, {pipeline_mode = #tpu.pipeline_mode<synchronous>, transform_indices = @transform_2, window_bounds = array<i64: 1, 128>}, {pipeline_mode = #tpu.pipeline_mode<synchronous>, transform_indices = @transform_3, window_bounds = array<i64: 128, 128>}, {pipeline_mode = #tpu.pipeline_mode<synchronous>, transform_indices = @transform_4, window_bounds = array<i64: 1, 128>}, {pipeline_mode = #tpu.pipeline_mode<synchronous>, transform_indices = @transform_5, window_bounds = array<i64: 128, 128>}, {pipeline_mode = #tpu.pipeline_mode<synchronous>, transform_indices = @transform_6, window_bounds = array<i64: 1, 128>}, {transform_indices = @transform_7, window_bounds = array<i64: 2, 128>}]} {
    %c0 = arith.constant 0 : index
    %c0_0 = arith.constant 0 : index
    %0 = vector.load %arg1[%c0, %c0_0] : memref<128x10xf32, #tpu.memory_space<vmem>>, vector<128x10xf32>
    %1 = arith.truncf %0 : vector<128x10xf32> to vector<128x10xbf16>
    %c0_1 = arith.constant 0 : index
    %c0_2 = arith.constant 0 : index
    %2 = vector.load %arg2[%c0_1, %c0_2] : memref<10x128xbf16, #tpu.memory_space<vmem>>, vector<10x128xbf16>
    %cst = arith.constant dense<0.000000e+00> : vector<128x128xf32>
    %3 = tpu.matmul %1, %2, %cst {dimension_numbers = #tpu.dot_dimension_numbers<[1], [0], [0], [1], [0, 0, 1, 1], [], []>} : vector<128x10xbf16>, vector<10x128xbf16>, vector<128x128xf32> -> vector<128x128xf32>
    %c0_3 = arith.constant 0 : index
    %c0_4 = arith.constant 0 : index
    %4 = vector.load %arg3[%c0_3, %c0_4] : memref<1x128xf32, #tpu.memory_space<vmem>>, vector<1x128xf32>
    %5 = vector.broadcast %4 : vector<1x128xf32> to vector<128x128xf32>
    %6 = arith.addf %3, %5 : vector<128x128xf32>
    %cst_5 = arith.constant 0.000000e+00 : f32
    %7 = vector.broadcast %cst_5 : f32 to vector<128x128xf32>
    %8 = arith.maximumf %6, %7 : vector<128x128xf32>
    %9 = arith.truncf %8 : vector<128x128xf32> to vector<128x128xbf16>
    %c0_6 = arith.constant 0 : index
    %c0_7 = arith.constant 0 : index
    %10 = vector.load %arg4[%c0_6, %c0_7] : memref<128x128xbf16, #tpu.memory_space<vmem>>, vector<128x128xbf16>
    %cst_8 = arith.constant dense<0.000000e+00> : vector<128x128xf32>
    %11 = tpu.matmul %9, %10, %cst_8 {dimension_numbers = #tpu.dot_dimension_numbers<[1], [0], [0], [1], [0, 0, 1, 1], [], []>} : vector<128x128xbf16>, vector<128x128xbf16>, vector<128x128xf32> -> vector<128x128xf32>
    %c0_9 = arith.constant 0 : index
    %c0_10 = arith.constant 0 : index
    %12 = vector.load %arg5[%c0_9, %c0_10] : memref<1x128xf32, #tpu.memory_space<vmem>>, vector<1x128xf32>
    %13 = vector.broadcast %12 : vector<1x128xf32> to vector<128x128xf32>
    %14 = arith.addf %11, %13 : vector<128x128xf32>
    %cst_11 = arith.constant 0.000000e+00 : f32
    %15 = vector.broadcast %cst_11 : f32 to vector<128x128xf32>
    %16 = arith.maximumf %14, %15 : vector<128x128xf32>
    %17 = arith.truncf %16 : vector<128x128xf32> to vector<128x128xbf16>
    %c0_12 = arith.constant 0 : index
    %c0_13 = arith.constant 0 : index
    %18 = vector.load %arg6[%c0_12, %c0_13] : memref<128x128xbf16, #tpu.memory_space<vmem>>, vector<128x128xbf16>
    %cst_14 = arith.constant dense<0.000000e+00> : vector<128x128xf32>
    %19 = tpu.matmul %17, %18, %cst_14 {dimension_numbers = #tpu.dot_dimension_numbers<[1], [0], [0], [1], [0, 0, 1, 1], [], []>} : vector<128x128xbf16>, vector<128x128xbf16>, vector<128x128xf32> -> vector<128x128xf32>
    %c0_15 = arith.constant 0 : index
    %c0_16 = arith.constant 0 : index
    %20 = vector.load %arg7[%c0_15, %c0_16] : memref<1x128xf32, #tpu.memory_space<vmem>>, vector<1x128xf32>
    %21 = vector.broadcast %20 : vector<1x128xf32> to vector<128x128xf32>
    %22 = arith.addf %19, %21 : vector<128x128xf32>
    %23 = tpu.transpose %22, [1, 0] : vector<128x128xf32> -> vector<128x128xf32>
    %24 = vector.extract_strided_slice %23 {offsets = [0, 0], sizes = [2, 128], strides = [1, 1]} : vector<128x128xf32> to vector<2x128xf32>
    %c0_17 = arith.constant 0 : index
    %c0_18 = arith.constant 0 : index
    %25 = vector.load %arg8[%c0_17, %c0_18] : memref<2x128xf32, #tpu.memory_space<vmem>>, vector<2x128xf32>
    tpu.vector_store %arg8[%c0_17, %c0_18], %24 {strides = array<i32>} : memref<2x128xf32, #tpu.memory_space<vmem>>, vector<2x128xf32>,
    return
  }
  func.func @transform_0(%arg0: i32) -> (i32, i32) {
    %c0_i32 = arith.constant 0 : i32
    %c0_i32_0 = arith.constant 0 : i32
    return %arg0, %c0_i32 : i32, i32
  }
  func.func @transform_1(%arg0: i32) -> (i32, i32) {
    %c0_i32 = arith.constant 0 : i32
    %c0_i32_0 = arith.constant 0 : i32
    %c0_i32_1 = arith.constant 0 : i32
    return %c0_i32, %c0_i32_0 : i32, i32
  }
  func.func @transform_2(%arg0: i32) -> (i32, i32) {
    %c0_i32 = arith.constant 0 : i32
    %c0_i32_0 = arith.constant 0 : i32
    %c0_i32_1 = arith.constant 0 : i32
    return %c0_i32, %c0_i32_0 : i32, i32
  }
  func.func @transform_3(%arg0: i32) -> (i32, i32) {
    %c0_i32 = arith.constant 0 : i32
    %c0_i32_0 = arith.constant 0 : i32
    %c0_i32_1 = arith.constant 0 : i32
    return %c0_i32, %c0_i32_0 : i32, i32
  }
  func.func @transform_4(%arg0: i32) -> (i32, i32) {
    %c0_i32 = arith.constant 0 : i32
    %c0_i32_0 = arith.constant 0 : i32
    %c0_i32_1 = arith.constant 0 : i32
    return %c0_i32, %c0_i32_0 : i32, i32
  }
  func.func @transform_5(%arg0: i32) -> (i32, i32) {
    %c0_i32 = arith.constant 0 : i32
    %c0_i32_0 = arith.constant 0 : i32
    %c0_i32_1 = arith.constant 0 : i32
    return %c0_i32, %c0_i32_0 : i32, i32
  }
  func.func @transform_6(%arg0: i32) -> (i32, i32) {
    %c0_i32 = arith.constant 0 : i32
    %c0_i32_0 = arith.constant 0 : i32
    %c0_i32_1 = arith.constant 0 : i32
    return %c0_i32, %c0_i32_0 : i32, i32
  }
  func.func @transform_7(%arg0: i32) -> (i32, i32) {
    %c0_i32 = arith.constant 0 : i32
    %c0_i32_0 = arith.constant 0 : i32
    return %c0_i32, %arg0 : i32, i32
  }
}

</mosaic_0001>

<bundles_post_ra>
// kernel: tpu_custom_call.1
= control target key start
LH: loop header
LB: loop body
LE: loop exit
PB: predicated region body
PF: predicated region fallthrough
CT: control target
= control target key end

     0   :  { %12 = vsyncpa [#allocation3], 0  ;;  %s1443_s0 = inlined_call_operand.vmem [shape: f32[256,10], index: 0, kind: input, shape index: {}]   ;;  %s1444_s1 = inlined_call_operand.vmem [shape: bf16[10,128], index: 1, kind: input, shape index: {}]   ;;  %s1445_s2 = inlined_call_operand.vmem [shape: f32[1,128], index: 2, kind: input, shape index: {}]   ;;  %s1446_s3 = inlined_call_operand.vmem [shape: bf16[128,128], index: 3, kind: input, shape index: {}]   ;;  %s1447_s4 = inlined_call_operand.vmem [shape: f32[1,128], index: 4, kind: input, shape index: {}]   ;;  %s1448_s5 = inlined_call_operand.vmem [shape: bf16[128,128], index: 5, kind: input, shape index: {}]   ;;  %s1449_s6 = inlined_call_operand.vmem [shape: f32[1,128], index: 6, kind: input, shape index: {}]   ;;  %s1450_s7 = inlined_call_operand.hbm [shape: f32[2,256], index: 7, kind: output, shape index: {}]  }
   0x1   :  { %14 = vsyncpa [#allocation3 + $0x1], 0  ;;  %s1258_s24 = smov 0   ;;  %s1260_s25 = smov 0  }
   0x2   :  { %s1262_s26 = smov 0   ;;  %s1264_s27 = smov 0  }
   0x3 LB: > { %s1279_s28 = sadd.s32 4294967295, %s1215_s27   ;;  %s934_s29 = sadd.s32 4294967294, %s1215_s27   ;;  %s1215_s27 = sphi %s1264_s27, %s1456_s27   ;;  %s1211_s26 = sphi %s1262_s26, %s1455_s26   ;;  %s1207_s25 = sphi %s1260_s25, %s1454_s25   ;;  %s1203_s24 = sphi %s1258_s24, %s1453_s24  }
   0x4   : > { %s1283_s30 = sadd.s32 1, %s1215_s27   ;;  %s179_s8 = sadd.s32 1, %s1211_s26 }
   0x5   : > { %s176_s9 = ssub.s32 %s1215_s27, %s1283_s30  ;;  %p189_p0 = scmp.ne.s32.totalorder %s1211_s26, %s1207_s25 }
   0x6   : > { %p177_p1 = scmp.eq.s32.totalorder %s176_s9, 0  ;;  %p190_p2 = scmp.eq.s32.totalorder %s1279_s28, 1 }
   0x7   : > { %p195_p3 = scmp.ne.s32.totalorder %s1207_s25, %s1203_s24  ;;  %p196_p4 = scmp.eq.s32.totalorder %s934_s29, 1 }
   0x8   : > { %s1294_s10 = scalar_select %p177_p1, %s1211_s26, %s179_s8  }
   0x9   : > { %p1296_p5 = por %p190_p2, %p189_p0  ;;  %p1300_p6 = por %p196_p4, %p195_p3 }
   0xa   : > { %p937_p7 = scmp.ge.s32.totalorder %s1215_s27, 1  ;;  %p241_p8 = scmp.lt.s32.totalorder %s1215_s27, 3 }
   0xc   : > { %p242_p9 = pnand %p937_p7, %p241_p8 }
   0xd   : > { %v1136_v0 = vld [vmem:[%s1444_s1] sm:$0x1f] (!%p242_p9)   ;;  %vm343_vm0 = vcmask (!%p242_p9), 1044480   ;;  %s939_s15 = sshll.u32 (!%p242_p9), %s1279_s28, 4  ;;  %v1138_v3 = vld [vmem:[%s1446_s3 + $0x8] sm:$0xff] (!%p242_p9)   ;;  %v1139_v4 = vld [vmem:[%s1446_s3 + $0x10] sm:$0xff] (!%p242_p9)  }
   0xe   : > { %245 = sbr.rel (%p242_p9) target bundleno = 830 (0x33e), region = 48  ;;  %v1137_v1 = vld [vmem:[%s1446_s3] sm:$0xff] (!%p242_p9)   ;;  %1096 = vmatprep.subr.msk.bf16.mxu0 (!%p242_p9), %vm343_vm0, %v1136_v0  ;;  %v345_v2 = vsel (!%p242_p9), %vm343_vm0, %v1136_v0, 0  ;;  %p274_p10 = scmp.lt.s32.totalorder (!%p242_p9), %s939_s15, 31  ;;  %v1140_v5 = vld [vmem:[%s1446_s3 + $0x18] sm:$0xff] (!%p242_p9)   ;;  %vm318_vm1 = vcmask (!%p242_p9), 80896  }
   0xf   : > { %1015 = vmatpush3.bf16.msra.mxu0 (!%p242_p9), %v345_v2  ;;  %1032 = vmatprep.subr.bf16.mxu1 (!%p242_p9), %v1137_v1  ;;  %v1141_v15 = vld [vmem:[%s1446_s3 + $0x20] sm:$0xff] (!%p242_p9)   ;;  %v1142_v20 = vld [vmem:[%s1446_s3 + $0x28] sm:$0xff] (!%p242_p9)   ;;  %v1143_v32 = vld [vmem:[%s1446_s3 + $0x30] sm:$0xff] (!%p242_p9)   ;;  %s270_s16 = sand.u32 (!%p242_p9), 1, %s1207_s25   ;;  %s970_s20 = sshll.u32 (!%p242_p9), %s1279_s28, 5 }
  0x10   : > { %1033 = vmatpush3.bf16.msra.mxu1 (!%p242_p9), %v1137_v1  ;;  %v1144_v33 = vld [vmem:[%s1446_s3 + $0x38] sm:$0xff] (!%p242_p9)   ;;  %v1145_v34 = vld [vmem:[%s1448_s5] sm:$0xff] (!%p242_p9)   ;;  %v1146_v35 = vld [vmem:[%s1448_s5 + $0x8] sm:$0xff] (!%p242_p9)   ;;  %s938_s17 = sshll.u32 (!%p242_p9), %s270_s16, 1  ;;  %s1403_s23 = scalar_lea.hbm (!%p242_p9), %s1450_s7, %s970_s20 }
  0x11   : > { %1034 = vmatprep.subr.bf16.mxu1 (!%p242_p9), %v1138_v3  ;;  %1064 = vmatprep.subr.bf16.mxu0 (!%p242_p9), %v1145_v34  ;;  %v1147_v36 = vld [vmem:[%s1448_s5 + $0x10] sm:$0xff] (!%p242_p9)   ;;  %v1148_v37 = vld [vmem:[%s1448_s5 + $0x18] sm:$0xff] (!%p242_p9)   ;;  %v1149_v38 = vld [vmem:[%s1448_s5 + $0x20] sm:$0xff] (!%p242_p9)   ;;  %s272_s18 = scalar_lea.vmem (!%p242_p9), [#allocation2], %s938_s17  ;;  %s862_s29 = scalar_lea.sflag (!%p242_p9), [#allocation3], %s270_s16 }
  0x12   : > { %v1150_v39 = vld [vmem:[%s1448_s5 + $0x28] sm:$0xff] (!%p242_p9)   ;;  %v941_v40 = vld [vmem:[%s1445_s2] ss:$0 sm:$0xff] (!%p242_p9)  ;;  %s875_s19 = sshll.u32 (!%p242_p9), %s272_s18, 4  ;;  %s1217_s9 = smov (!%p242_p9), [#allocation2]   ;;  %s1398_s19 = int_to_ptr.vmem [resolvable:$true] %s875_s19 }
  0x13   : > { %s1157_s28 = sshll.u32 (!%p242_p9), %s1217_s9, 4  ;;  %s1158_s28 = int_to_ptr.vmem [resolvable:$false] %s1157_s28 }
  0x14   : > { %1035 = vmatpush3.bf16.msra.mxu1 (!%p242_p9), %v1138_v3  ;;  %s1159_s13 = scalar_lea.vmem (!%p242_p9), %s1158_s28, 64  ;;  %p1160_p0 = scmp.lt.s32.totalorder (!%p242_p9), %s1398_s19, %s1158_s28 }
  0x15   : > { %s1458_s15 = smov (!%p274_p10, %s939_s15), 31  ;;  %1036 = vmatprep.subr.bf16.mxu1 %v1139_v4 }
  0x16   : > { %s940_s22 = sshll.u32 %s1458_s15, 3 }
  0x17   : > { %s1322_s8 = scalar_lea.vmem %s1443_s0, %s940_s22 }
  0x18   : > { %v280_v6 = vld [vmem:[%s1322_s8] sm:$0xff]  ;;  %v281_v7 = vld [vmem:[%s1322_s8 + $0x8] sm:$0xff]  ;;  %v282_v8 = vld [vmem:[%s1322_s8 + $0x10] sm:$0xff]  ;;  %1037 = vmatpush3.bf16.msra.mxu1 %v1139_v4 }
  0x19   : > { %v296_v9 = vpack.c.bf16 %v281_v7, %v280_v6  ;;  %v283_v10 = vld [vmem:[%s1322_s8 + $0x18] sm:$0xff]  ;;  %v284_v11 = vld [vmem:[%s1322_s8 + $0x20] sm:$0xff]  ;;  %v285_v12 = vld [vmem:[%s1322_s8 + $0x28] sm:$0xff]  ;;  %1038 = vmatprep.subr.bf16.mxu1 %v1140_v5 }
  0x1a   : > { %v297_v13 = vpack.c.bf16 %v283_v10, %v282_v8  ;;  %v298_v14 = vpack.c.bf16 %v285_v12, %v284_v11  ;;  %v286_v16 = vld [vmem:[%s1322_s8 + $0x30] sm:$0xff]  ;;  %v287_v17 = vld [vmem:[%s1322_s8 + $0x38] sm:$0xff]  ;;  %v288_v18 = vld [vmem:[%s1322_s8 + $0x40] sm:$0xff] }
  0x1b   : > { %1016 = vmatprep.mubr.msk.bf16.mxu0 %vm318_vm1, %v296_v9  ;;  %v289_v19 = vld [vmem:[%s1322_s8 + $0x48] sm:$0xff]  ;;  %v299_v21 = vpack.c.bf16 %v287_v17, %v286_v16  ;;  %v290_v23 = vld [vmem:[%s1322_s8 + $0x50] sm:$0xff]  ;;  %v291_v24 = vld [vmem:[%s1322_s8 + $0x58] sm:$0xff] }
  0x1c   : > { %1017 = vmatmul.mubr.msk.bf16.vlgmr.msra.gmra.mrb[0].mxu0 %vm318_vm1, %v297_v13  ;;  %1039 = vmatpush3.bf16.msra.mxu1 %v1140_v5  ;;  %v300_v22 = vpack.c.bf16 %v289_v19, %v288_v18  ;;  %v292_v25 = vld [vmem:[%s1322_s8 + $0x60] sm:$0xff]  ;;  %v293_v26 = vld [vmem:[%s1322_s8 + $0x68] sm:$0xff]  ;;  %v301_v27 = vpack.c.bf16 %v291_v24, %v290_v23  ;;  %v294_v29 = vld [vmem:[%s1322_s8 + $0x70] sm:$0xff] }
  0x1d   : > { %1020 = vmatprep.mubr.msk.bf16.mxu0 %vm318_vm1, %v298_v14  ;;  %1040 = vmatprep.subr.bf16.mxu1 %v1141_v15  ;;  %v302_v28 = vpack.c.bf16 %v293_v26, %v292_v25  ;;  %v295_v30 = vld [vmem:[%s1322_s8 + $0x78] sm:$0xff]  ;;  %s1153_s8 = scalar_lea.vmem %s1398_s19, 32 }
  0x1e   : > { %v303_v31 = vpack.c.bf16 %v295_v30, %v294_v29  ;;  %1065 = vmatpush3.bf16.msra.mxu0 %v1145_v34  ;;  %v1152_v34 = vld [vmem:[%s1448_s5 + $0x38] sm:$0xff]   ;;  %p1154_p11 = scmp.ne.s32.totalorder %s1398_s19, %s1153_s8  ;;  %p1161_p1 = scmp.lt.s32.totalorder %s1159_s13, %s1153_s8 }
  0x1f   : > { %1066 = vmatprep.subr.bf16.mxu0 %v1146_v35 }
  0x20   : > { %1041 = vmatpush3.bf16.msra.mxu1 %v1141_v15  ;;  %p1155_p12 = pnand %p1154_p11, %p1296_p5  ;;  %p1162_p2 = por %p1161_p1, %p1160_p0 }
  0x21   : > { %1042 = vmatprep.subr.bf16.mxu1 %v1142_v20 }
  0x22   : > { %1067 = vmatpush3.bf16.msra.mxu0 %v1146_v35  ;;  %v951_v35 = vld [vmem:[%s1447_s4] ss:$0 sm:$0xff]  ;;  %p1156_p13 = pneg %p1155_p12 }
  0x23   : > { %1068 = vmatprep.subr.bf16.mxu0 %v1147_v36 }
  0x24   : > { %1021 = vmatmul.mubr.msk.bf16.gmra.mrb[4].mxu0 %vm318_vm1, %v299_v21  ;;  %1043 = vmatpush3.bf16.msra.mxu1 %v1142_v20  ;;  %p1163_p3 = pnand %p1162_p2, %p1156_p13 }
  0x25   : > { %1024 = vmatprep.mubr.msk.bf16.mxu0 %vm318_vm1, %v300_v22  ;;  %1044 = vmatprep.subr.bf16.mxu1 %v1143_v32 }
  0x26   : > { %1069 = vmatpush3.bf16.msra.mxu0 %v1147_v36 }
  0x27   : > { %1070 = vmatprep.subr.bf16.mxu0 %v1148_v37 }
  0x28   : > { %1045 = vmatpush3.bf16.msra.mxu1 %v1143_v32 }
  0x29   : > { %1046 = vmatprep.subr.bf16.mxu1 %v1144_v33 }
  0x2a   : > { %1071 = vmatpush3.bf16.msra.mxu0 %v1148_v37 }
  0x2b   : > { %1072 = vmatprep.subr.bf16.mxu0 %v1149_v38 }
  0x2c   : > { %1025 = vmatmul.mubr.msk.bf16.gmra.mrb[8].mxu0 %vm318_vm1, %v301_v27  ;;  %1047 = vmatpush3.bf16.msra.mxu1 %v1144_v33  ;;  %v1151_v33 = vld [vmem:[%s1448_s5 + $0x30] sm:$0xff]  }
  0x2d   : > { %1028 = vmatprep.mubr.msk.bf16.mxu0 %vm318_vm1, %v302_v28 }
  0x2e   : > { %1073 = vmatpush3.bf16.msra.mxu0 %v1149_v38 }
  0x2f   : > { %1074 = vmatprep.subr.bf16.mxu0 %v1150_v39 }
  0x32   : > { %1075 = vmatpush3.bf16.msra.mxu0 %v1150_v39 }
  0x33   : > { %1076 = vmatprep.subr.bf16.mxu0 %v1151_v33 }
  0x34   : > { %1029 = vmatmul.mubr.msk.bf16.gmra.mrb[12].mxu0 %vm318_vm1, %v303_v31 }
  0x36   : > { %1077 = vmatpush3.bf16.msra.mxu0 %v1151_v33 }
  0x37   : > { %1078 = vmatprep.subr.bf16.mxu0 %v1152_v34 }
  0x3a   : > { %1079 = vmatpush3.bf16.msra.mxu0 %v1152_v34 }
  0xef   : > { %v1018_v41 = vpop.f32.mrb[0].mxu0 }
  0xf0   : > { %v390_v42 = vadd.f32 %v1018_v41, %v941_v40  ;;  %v381_v43 = vpop.f32.mrb[1].mxu0 }
  0xf1   : > { %v382_v44 = vadd.f32 %v941_v40, %v381_v43  ;;  %v1019_v45 = vpop.f32.mrb[2].mxu0 }
  0xf2   : > { %v393_v46 = vadd.f32 %v1019_v45, %v941_v40  ;;  %v384_v47 = vpop.f32.mrb[3].mxu0  ;;  %v446_v49 = vmax.f32 %v390_v42, 0.0 }
  0xf3   : > { %v385_v48 = vadd.f32 %v941_v40, %v384_v47  ;;  %v444_v51 = vmax.f32 %v382_v44, 0.0 }
  0xf4   : > { %v447_v50 = vmax.f32 %v393_v46, 0.0 }
  0xf5   : > { %v445_v52 = vmax.f32 %v385_v48, 0.0 }
  0xf6   : > { %v461_v53 = vpack.c.bf16 %v447_v50, %v446_v49 }
  0xf7   : > { %v1022_v54 = vpop.f32.mrb[4].mxu0  ;;  %v460_v55 = vpack.c.bf16 %v445_v52, %v444_v51 }
  0xf8   : > { %v406_v56 = vadd.f32 %v1022_v54, %v941_v40  ;;  %v397_v57 = vpop.f32.mrb[5].mxu0 }
  0xf9   : > { %v398_v58 = vadd.f32 %v941_v40, %v397_v57  ;;  %v1023_v59 = vpop.f32.mrb[6].mxu0  ;;  %1048 = vmatprep.mubr.bf16.mxu1 %v460_v55 }
  0xfa   : > { %v450_v60 = vmax.f32 %v406_v56, 0.0  ;;  %v409_v61 = vadd.f32 %v1023_v59, %v941_v40  ;;  %v400_v62 = vpop.f32.mrb[7].mxu0  ;;  %1049 = vmatmul.mubr.bf16.vlgmr.msra.gmra.mrb[0].mxu1 %v461_v53 }
  0xfb   : > { %v448_v63 = vmax.f32 %v398_v58, 0.0  ;;  %v401_v0 = vadd.f32 %v941_v40, %v400_v62 }
  0xfc   : > { %v451_v1 = vmax.f32 %v409_v61, 0.0 }
  0xfd   : > { %v449_v2 = vmax.f32 %v401_v0, 0.0 }
  0xfe   : > { %v463_v3 = vpack.c.bf16 %v451_v1, %v450_v60 }
  0xff   : > { %v462_v4 = vpack.c.bf16 %v449_v2, %v448_v63  ;;  %v1026_v5 = vpop.f32.mrb[8].mxu0 }
 0x100   : > { %v422_v6 = vadd.f32 %v1026_v5, %v941_v40  ;;  %v413_v7 = vpop.f32.mrb[9].mxu0 }
 0x101   : > { %1052 = vmatprep.mubr.bf16.mxu1 %v462_v4  ;;  %v414_v8 = vadd.f32 %v941_v40, %v413_v7  ;;  %v1027_v9 = vpop.f32.mrb[10].mxu0 }
 0x102   : > { %1053 = vmatmul.mubr.bf16.gmra.mrb[4].mxu1 %v463_v3  ;;  %v454_v10 = vmax.f32 %v422_v6, 0.0  ;;  %v425_v11 = vadd.f32 %v1027_v9, %v941_v40  ;;  %v416_v12 = vpop.f32.mrb[11].mxu0 }
 0x103   : > { %v452_v13 = vmax.f32 %v414_v8, 0.0  ;;  %v417_v14 = vadd.f32 %v941_v40, %v416_v12 }
 0x104   : > { %v455_v15 = vmax.f32 %v425_v11, 0.0 }
 0x105   : > { %v453_v16 = vmax.f32 %v417_v14, 0.0 }
 0x106   : > { %v465_v17 = vpack.c.bf16 %v455_v15, %v454_v10 }
 0x107   : > { %v464_v18 = vpack.c.bf16 %v453_v16, %v452_v13  ;;  %v1030_v19 = vpop.f32.mrb[12].mxu0 }
 0x108   : > { %v438_v20 = vadd.f32 %v1030_v19, %v941_v40  ;;  %v429_v21 = vpop.f32.mrb[13].mxu0 }
 0x109   : > { %1056 = vmatprep.mubr.bf16.mxu1 %v464_v18  ;;  %v430_v22 = vadd.f32 %v941_v40, %v429_v21  ;;  %v1031_v23 = vpop.f32.mrb[14].mxu0 }
 0x10a   : > { %1057 = vmatmul.mubr.bf16.gmra.mrb[8].mxu1 %v465_v17  ;;  %v458_v24 = vmax.f32 %v438_v20, 0.0  ;;  %v441_v25 = vadd.f32 %v1031_v23, %v941_v40  ;;  %v432_v26 = vpop.f32.mrb[15].mxu0 }
 0x10b   : > { %v456_v27 = vmax.f32 %v430_v22, 0.0  ;;  %v433_v28 = vadd.f32 %v941_v40, %v432_v26 }
 0x10c   : > { %v459_v29 = vmax.f32 %v441_v25, 0.0 }
 0x10d   : > { %v457_v30 = vmax.f32 %v433_v28, 0.0  ;;  %v960_v28 = vld [vmem:[%s1449_s6] ss:$0 sm:$0xff] }
 0x10e   : > { %v467_v31 = vpack.c.bf16 %v459_v29, %v458_v24 }
 0x10f   : > { %v466_v32 = vpack.c.bf16 %v457_v30, %v456_v27 }
 0x111   : > { %1060 = vmatprep.mubr.bf16.mxu1 %v466_v32 }
 0x112   : > { %1061 = vmatmul.mubr.bf16.gmra.mrb[12].mxu1 %v467_v31 }
 0x1cd   : > { %v1050_v36 = vpop.f32.mrb[0].mxu1 }
 0x1ce   : > { %v582_v37 = vadd.f32 %v1050_v36, %v951_v35  ;;  %v573_v38 = vpop.f32.mrb[1].mxu1 }
 0x1cf   : > { %v574_v39 = vadd.f32 %v951_v35, %v573_v38  ;;  %v1051_v40 = vpop.f32.mrb[2].mxu1 }
 0x1d0   : > { %v585_v41 = vadd.f32 %v1051_v40, %v951_v35  ;;  %v576_v42 = vpop.f32.mrb[3].mxu1  ;;  %v638_v44 = vmax.f32 %v582_v37, 0.0 }
 0x1d1   : > { %v577_v43 = vadd.f32 %v951_v35, %v576_v42  ;;  %v636_v46 = vmax.f32 %v574_v39, 0.0 }
 0x1d2   : > { %v639_v45 = vmax.f32 %v585_v41, 0.0 }
 0x1d3   : > { %v637_v47 = vmax.f32 %v577_v43, 0.0 }
 0x1d4   : > { %v653_v48 = vpack.c.bf16 %v639_v45, %v638_v44 }
 0x1d5   : > { %v652_v49 = vpack.c.bf16 %v637_v47, %v636_v46  ;;  %v1054_v50 = vpop.f32.mrb[4].mxu1 }
 0x1d6   : > { %v598_v51 = vadd.f32 %v1054_v50, %v951_v35  ;;  %v589_v52 = vpop.f32.mrb[5].mxu1 }
 0x1d7   : > { %v590_v53 = vadd.f32 %v951_v35, %v589_v52  ;;  %v1055_v54 = vpop.f32.mrb[6].mxu1  ;;  %1080 = vmatprep.mubr.bf16.mxu0 %v652_v49 }
 0x1d8   : > { %v642_v55 = vmax.f32 %v598_v51, 0.0  ;;  %v601_v56 = vadd.f32 %v1055_v54, %v951_v35  ;;  %v592_v57 = vpop.f32.mrb[7].mxu1  ;;  %1081 = vmatmul.mubr.bf16.vlgmr.msra.gmra.mrb[16].mxu0 %v653_v48 }
 0x1d9   : > { %v640_v58 = vmax.f32 %v590_v53, 0.0  ;;  %v593_v59 = vadd.f32 %v951_v35, %v592_v57 }
 0x1da   : > { %v643_v60 = vmax.f32 %v601_v56, 0.0 }
 0x1db   : > { %v641_v61 = vmax.f32 %v593_v59, 0.0 }
 0x1dc   : > { %v655_v62 = vpack.c.bf16 %v643_v60, %v642_v55 }
 0x1dd   : > { %v654_v63 = vpack.c.bf16 %v641_v61, %v640_v58  ;;  %v1058_v0 = vpop.f32.mrb[8].mxu1 }
 0x1de   : > { %v614_v1 = vadd.f32 %v1058_v0, %v951_v35  ;;  %v605_v2 = vpop.f32.mrb[9].mxu1 }
 0x1df   : > { %1084 = vmatprep.mubr.bf16.mxu0 %v654_v63  ;;  %v606_v3 = vadd.f32 %v951_v35, %v605_v2  ;;  %v1059_v4 = vpop.f32.mrb[10].mxu1 }
 0x1e0   : > { %1085 = vmatmul.mubr.bf16.gmra.mrb[20].mxu0 %v655_v62  ;;  %v646_v5 = vmax.f32 %v614_v1, 0.0  ;;  %v617_v6 = vadd.f32 %v1059_v4, %v951_v35  ;;  %v608_v7 = vpop.f32.mrb[11].mxu1 }
 0x1e1   : > { %v644_v8 = vmax.f32 %v606_v3, 0.0  ;;  %v609_v9 = vadd.f32 %v951_v35, %v608_v7 }
 0x1e2   : > { %v647_v10 = vmax.f32 %v617_v6, 0.0 }
 0x1e3   : > { %v645_v11 = vmax.f32 %v609_v9, 0.0 }
 0x1e4   : > { %v657_v12 = vpack.c.bf16 %v647_v10, %v646_v5 }
 0x1e5   : > { %v656_v13 = vpack.c.bf16 %v645_v11, %v644_v8  ;;  %v1062_v14 = vpop.f32.mrb[12].mxu1 }
 0x1e6   : > { %v630_v15 = vadd.f32 %v1062_v14, %v951_v35  ;;  %v621_v16 = vpop.f32.mrb[13].mxu1 }
 0x1e7   : > { %1088 = vmatprep.mubr.bf16.mxu0 %v656_v13  ;;  %v622_v17 = vadd.f32 %v951_v35, %v621_v16  ;;  %v1063_v18 = vpop.f32.mrb[14].mxu1 }
 0x1e8   : > { %1089 = vmatmul.mubr.bf16.gmra.mrb[24].mxu0 %v657_v12  ;;  %v650_v19 = vmax.f32 %v630_v15, 0.0  ;;  %v633_v20 = vadd.f32 %v1063_v18, %v951_v35  ;;  %v624_v21 = vpop.f32.mrb[15].mxu1 }
 0x1e9   : > { %v648_v22 = vmax.f32 %v622_v17, 0.0  ;;  %v625_v23 = vadd.f32 %v951_v35, %v624_v21 }
 0x1ea   : > { %v651_v24 = vmax.f32 %v633_v20, 0.0 }
 0x1eb   : > { %v649_v25 = vmax.f32 %v625_v23, 0.0 }
 0x1ec   : > { %v659_v26 = vpack.c.bf16 %v651_v24, %v650_v19 }
 0x1ed   : > { %v658_v27 = vpack.c.bf16 %v649_v25, %v648_v22 }
 0x1ef   : > { %1092 = vmatprep.mubr.bf16.mxu0 %v658_v27 }
 0x1f0   : > { %1093 = vmatmul.mubr.bf16.gmra.mrb[28].mxu0 %v659_v26 }
 0x2ab   : > { %v1082_v29 = vpop.f32.mrb[16].mxu0 }
 0x2ac   : > { %v765_v30 = vpop.f32.mrb[17].mxu0  ;;  %v774_v37 = vadd.f32 %v1082_v29, %v960_v28 }
 0x2ad   : > { %v1083_v31 = vpop.f32.mrb[18].mxu0  ;;  %v766_v32 = vadd.f32 %v960_v28, %v765_v30 }
 0x2ae   : > { %v768_v33 = vpop.f32.mrb[19].mxu0  ;;  %v777_v40 = vadd.f32 %v1083_v31, %v960_v28 }
 0x2af   : > { %828 = vxpose.xlu0.b32.start [1/16] (narrow) %v766_v32, 8  ;;  %v769_v34 = vadd.f32 %v960_v28, %v768_v33 }
 0x2b3   : > { %v1086_v36 = vpop.f32.mrb[20].mxu0  ;;  %829 = vxpose.xlu0.b32.cont [2/16] (narrow) %v769_v34, 8 }
 0x2b4   : > { %v781_v35 = vpop.f32.mrb[21].mxu0  ;;  %v790_v49 = vadd.f32 %v1086_v36, %v960_v28 }
 0x2b5   : > { %v1087_v38 = vpop.f32.mrb[22].mxu0  ;;  %v782_v43 = vadd.f32 %v960_v28, %v781_v35 }
 0x2b6   : > { %v784_v39 = vpop.f32.mrb[23].mxu0  ;;  %v793_v52 = vadd.f32 %v1087_v38, %v960_v28 }
 0x2b7   : > { %830 = vxpose.xlu0.b32.cont [3/16] (narrow) %v774_v37, 8  ;;  %v785_v46 = vadd.f32 %v960_v28, %v784_v39 }
 0x2bb   : > { %831 = vxpose.xlu0.b32.cont [4/16] (narrow) %v777_v40, 8  ;;  %v1090_v41 = vpop.f32.mrb[24].mxu0 }
 0x2bc   : > { %v797_v42 = vpop.f32.mrb[25].mxu0  ;;  %v806_v55 = vadd.f32 %v1090_v41, %v960_v28 }
 0x2bd   : > { %v1091_v44 = vpop.f32.mrb[26].mxu0  ;;  %v798_v53 = vadd.f32 %v960_v28, %v797_v42 }
 0x2be   : > { %v800_v45 = vpop.f32.mrb[27].mxu0  ;;  %v809_v56 = vadd.f32 %v1091_v44, %v960_v28 }
 0x2bf   : > { %832 = vxpose.xlu0.b32.cont [5/16] (narrow) %v782_v43, 8  ;;  %v801_v54 = vadd.f32 %v960_v28, %v800_v45 }
 0x2c3   : > { %833 = vxpose.xlu0.b32.cont [6/16] (narrow) %v785_v46, 8  ;;  %v1094_v47 = vpop.f32.mrb[28].mxu0 }
 0x2c4   : > { %v813_v48 = vpop.f32.mrb[29].mxu0  ;;  %v822_v59 = vadd.f32 %v1094_v47, %v960_v28 }
 0x2c5   : > { %v1095_v50 = vpop.f32.mrb[30].mxu0  ;;  %v814_v57 = vadd.f32 %v960_v28, %v813_v48 }
 0x2c6   : > { %v816_v51 = vpop.f32.mrb[31].mxu0  ;;  %v825_v60 = vadd.f32 %v1095_v50, %v960_v28 }
 0x2c7   : > { %834 = vxpose.xlu0.b32.cont [7/16] (narrow) %v790_v49, 8  ;;  %v817_v58 = vadd.f32 %v960_v28, %v816_v51 }
 0x2cb   : > { %835 = vxpose.xlu0.b32.cont [8/16] (narrow) %v793_v52, 8 }
 0x2cf   : > { %836 = vxpose.xlu0.b32.cont [9/16] (narrow) %v798_v53, 8 }
 0x2d3   : > { %837 = vxpose.xlu0.b32.cont [10/16] (narrow) %v801_v54, 8 }
 0x2d7   : > { %838 = vxpose.xlu0.b32.cont [11/16] (narrow) %v806_v55, 8 }
 0x2db   : > { %839 = vxpose.xlu0.b32.cont [12/16] (narrow) %v809_v56, 8 }
 0x2df   : > { %840 = vxpose.xlu0.b32.cont [13/16] (narrow) %v814_v57, 8 }
 0x2e3   : > { %841 = vxpose.xlu0.b32.cont [14/16] (narrow) %v817_v58, 8 }
 0x2e7   : > { %842 = vxpose.xlu0.b32.cont [15/16] (narrow) %v822_v59, 8 }
 0x2eb   : > { %843 = vxpose.xlu0.b32.end [16/16] (narrow) %v825_v60, 8 }
 0x32f   : > { %v844_v61 = vpop.trf.xlu0 }
 0x330   : > { %860 = vst [vmem:[%s272_s18] sm:$0x3] %v844_v61 }
 0x331   : > { %1166 = shalt.err (!%p1163_p3)
}
 0x332   : > { %s1167_s14 = scalar_lea.hbm %s1403_s23, 32  ;;  %s1171_s17 = scalar_lea.hbm %s1450_s7, 64 }
 0x333   : > { %p1168_p4 = scmp.ne.s32.totalorder %s1403_s23, %s1167_s14  ;;  %p1172_p9 = scmp.lt.u32.totalorder %s1403_s23, %s1450_s7 }
 0x334   : > { %p1173_p10 = scmp.lt.u32.totalorder %s1171_s17, %s1167_s14  ;;  %p1175_p12 = scmp.lt.u32.totalorder %s1167_s14, %s1403_s23 }
 0x335   : > { %p1169_p7 = pnand %p1168_p4, %p1296_p5 }
 0x336   : > { %p1174_p11 = por %p1173_p10, %p1172_p9 }
 0x337   : > { %p1170_p8 = pneg %p1169_p7 }
 0x338   : > { %p1176_p13 = por %p1175_p12, %p1174_p11 }
 0x33a   : > { %p1177_p0 = pnand %p1176_p13, %p1170_p8 }
 0x33c   : > { %1180 = shalt.err (!%p1177_p0)
}
 0x33d   : > { %1097 = dma.vmem_to_hbm [thread:$0]  (%p1296_p5), %s1398_s19, 32, %s1403_s23, %s862_s29  }
 0x33e PF: > { %p1103_p1 = scmp.ge.s32.totalorder %s1215_s27, 2  ;;  %s887_s21 = sand.u32 1, %s1203_s24  }
 0x33f   : > { %s888_s22 = scalar_lea.sflag [#allocation3], %s887_s21 }
 0x340   : > { %p1100_p2 = pnand %p1103_p1, %p1300_p6 }
 0x342   : > { %1198 = dma.done.wait (!%p1100_p2), %s888_s22, 32  }
 0x343   : > { %1200 = vsyncadd (!%p1100_p2), %s888_s22, 4294967264  ;;  %p17_p3 = scmp.ge.s32.totalorder %s1283_s30, 4   ;;  %s1453_s24 = smov %s1207_s25 }
 0x344   : > { %s1454_s25 = smov %s1211_s26  ;;  %s1455_s26 = smov %s1294_s10 }
 0x345   : > { %s1456_s27 = smov %s1283_s30  ;;  %19 = sbr.rel (!%p17_p3) target bundleno = 3 (0x3), region = 83 }
 0x34c   :  { %893 = vsyncpa [#allocation3], 1 }
 0x34d   :  { %895 = vsyncpa [#allocation3 + $0x1], 1 }

</bundles_post_ra>
